<compile_context>
chip_gen: v7x
topology: tpu7x:2x2x1
jax: 0.10.0
libtpu: 0.0.40
codegen_flags: <defaults>
</compile_context>

<pallas_src>
import functools

import jax
import jax.numpy as jnp
from jax import lax
from jax.experimental import pallas as pl
from jax.experimental.pallas import tpu as pltpu

_EPS = 1e-7
_MIN_GRID_STEPS = 8        # keep the grid >= this so 2-TC chips (v7x) stay busy


def _round_up(a, b):
    return -(-a // b) * b


def _sublane_multiple(dtype):
    # native sublane packing: 8 rows for 4-byte, 16 for 2-byte, 32 for 1-byte
    return max(8, 32 // jnp.dtype(dtype).itemsize)


@functools.lru_cache(maxsize=None)
def _budgets():
    """(target block bytes, scoped vmem limit bytes), per TPU generation."""
    try:
        vmem_cap = int(pltpu.get_tpu_info().vmem_capacity_bytes)
    except Exception:
        vmem_cap = 64 * 1024 * 1024           # conservative (v7x-sized)
    if vmem_cap >= 96 * 1024 * 1024:          # v5e / v6e: 128 MiB physical VMEM
        return 12 * 1024 * 1024, 80 * 1024 * 1024
    return 6 * 1024 * 1024, 44 * 1024 * 1024  # v7x (64 MiB physical) / unknown


def _pick_rows(total_rows, padded_row_bytes, sub, block_target):
    """Largest row tile (multiple of `sub`, or full extent) fitting the padded
    per-block budget, capped so the grid keeps >= _MIN_GRID_STEPS steps."""
    rows = max(sub, block_target // max(1, padded_row_bytes))
    rows = max(sub, (rows // sub) * sub)
    cap = _round_up(pl.cdiv(total_rows, _MIN_GRID_STEPS), sub)
    rows = min(rows, max(cap, sub))
    if rows >= total_rows:
        return total_rows                      # full extent is always legal
    return rows


def _pow(x, power):
    if power == 2:
        return x * x
    if float(power) == int(power):
        # integer_pow: matches torch semantics for negative bases
        return lax.integer_pow(x, int(power))
    return jnp.power(x, power)


def _root(s, power):
    if power == 2:
        return jnp.sqrt(s)
    return jnp.power(s, 1.0 / power)


def _inv_denominator(norm, approx):
    denom = norm + _EPS
    if approx:
        return pl.reciprocal(denom, approx=True)   # EUP slot, otherwise idle
    return 1.0 / denom


# ----------------------------- kernels ---------------------------------------


def _lane_reduce_kernel(x_ref, o_ref, *, power, approx):
    """Block (tm, C): reduce over the lane (last) axis; narrow recip + bcast mul."""
    x = x_ref[...].astype(jnp.float32)
    s = jnp.sum(_pow(x, power), axis=-1, keepdims=True)        # (tm, 1)
    inv = _inv_denominator(_root(s, power), approx)             # narrow
    o_ref[...] = (x * inv).astype(o_ref.dtype)


def _grouped_lane_kernel(x_ref, mask_ref, o_ref, *, power, approx):
    """Block (tm, L) with L = G*C (G logical rows packed per physical row).

    mask[i, j] = (i // C == j // C); xp @ mask broadcasts each group's sum to
    every lane of that group on the MXU, keeping all I/O 128-lane dense.
    mask_ref dtype selects f32 (exact) or bf16 (fast) MXU operands.
    """
    x = x_ref[...].astype(jnp.float32)
    xp = _pow(x, power).astype(mask_ref.dtype)
    s = jnp.dot(xp, mask_ref[...], preferred_element_type=jnp.float32)
    inv = _inv_denominator(_root(s, power), approx)             # full width here
    o_ref[...] = (x * inv).astype(o_ref.dtype)


def _sublane_reduce_kernel(x_ref, o_ref, *, power, approx):
    """Block (tn, C, thw): channels on sublanes, spatial on lanes; reduce axis 1."""
    x = x_ref[...].astype(jnp.float32)
    s = jnp.sum(_pow(x, power), axis=1, keepdims=True)          # (tn, 1, thw)
    inv = _inv_denominator(_root(s, power), approx)             # narrow (C-wise)
    o_ref[...] = (x * inv).astype(o_ref.dtype)


def _norm_accum_kernel(x_ref, n_ref, *, power, c_total, tile_c, ragged):
    """Wide-C fallback pass 1: accumulate the Lp sum over C tiles into n_ref."""
    j = pl.program_id(1)

    @pl.when(j == 0)
    def _():
        n_ref[...] = jnp.zeros_like(n_ref)

    x = x_ref[...].astype(jnp.float32)
    xp = _pow(x, power)
    if ragged:
        lane = lax.broadcasted_iota(jnp.int32, xp.shape, 1)
        xp = jnp.where(j * tile_c + lane < c_total, xp, 0.0)
    n_ref[...] += jnp.sum(xp, axis=-1, keepdims=True)

    @pl.when(j == pl.num_programs(1) - 1)
    def _():
        n_ref[...] = _root(n_ref[...], power)


def _scale_kernel(x_ref, n_ref, o_ref, *, approx):
    """Wide-C fallback pass 2: out = x * 1/(norm + eps)."""
    inv = _inv_denominator(n_ref[...].astype(jnp.float32), approx)
    o_ref[...] = (x_ref[...].astype(jnp.float32) * inv).astype(o_ref.dtype)


# ----------------------------- wrappers ---------------------------------------


def _find_pack_factor(M, C):
    """Smallest G with G*C >= 128, G*C <= ~256, and G | M (zero-copy packing)."""
    g0 = pl.cdiv(128, C)
    g_max = max(g0, 256 // C)
    for g in range(g0, g_max + 1):
        if M % g == 0:
            return g
    return None


def _normalize_wide_c(x2d, power, approx, sub, itemsize, block_target, vmem_limit):
    """Two-pass path for extremely wide rows (minimal (sub, C) block won't fit
    the VMEM budget): C-tiled accumulator pass, then a C-parallel rescale pass."""
    M, C = x2d.shape
    lane_budget = max(128, (block_target // (sub * itemsize)) // 128 * 128)
    tc = min(_round_up(C, 128), lane_budget)
    tm = _pick_rows(M, tc * itemsize, sub, block_target)
    ragged = (C % tc) != 0

    norm = pl.pallas_call(
        functools.partial(_norm_accum_kernel, power=power, c_total=C, tile_c=tc,
                          ragged=ragged),
        out_shape=jax.ShapeDtypeStruct((M, 1), jnp.float32),
        grid_spec=pltpu.PrefetchScalarGridSpec(
            num_scalar_prefetch=0,
            grid=(pl.cdiv(M, tm), pl.cdiv(C, tc)),
            in_specs=[pl.BlockSpec((tm, tc), lambda i, j: (i, j))],
            out_specs=pl.BlockSpec((tm, 1), lambda i, j: (i, 0)),
        ),
        compiler_params=pltpu.CompilerParams(
            dimension_semantics=("parallel", "arbitrary"),
            vmem_limit_bytes=vmem_limit),
    )(x2d)

    return pl.pallas_call(
        functools.partial(_scale_kernel, approx=approx),
        out_shape=jax.ShapeDtypeStruct((M, C), x2d.dtype),
        grid_spec=pltpu.PrefetchScalarGridSpec(
            num_scalar_prefetch=0,
            grid=(pl.cdiv(M, tm), pl.cdiv(C, tc)),
            in_specs=[pl.BlockSpec((tm, tc), lambda i, j: (i, j)),
                      pl.BlockSpec((tm, 1), lambda i, j: (i, 0))],
            out_specs=pl.BlockSpec((tm, tc), lambda i, j: (i, j)),
        ),
        compiler_params=pltpu.CompilerParams(
            dimension_semantics=("parallel", "parallel"),
            vmem_limit_bytes=vmem_limit),
    )(x2d, norm)


def _normalize_last_axis(x2d, power, approx, mxu_bf16):
    """x2d: (M, C); reduction over the last axis (torch dim=1 for 2-D input)."""
    M, C = x2d.shape
    dtype = x2d.dtype
    itemsize = jnp.dtype(dtype).itemsize
    sub = _sublane_multiple(dtype)
    block_target, vmem_limit = _budgets()
    params = pltpu.CompilerParams(dimension_semantics=("parallel",),
                                  vmem_limit_bytes=vmem_limit)

    if C >= 128:
        row_bytes = _round_up(C, 128) * itemsize           # padded footprint
        # robustness: if even a minimal block (x4 double-buffered in+out) can't
        # fit comfortably, go two-pass C-tiled instead of failing to compile.
        if 4 * sub * row_bytes > vmem_limit // 2:
            return _normalize_wide_c(x2d, power, approx, sub, itemsize,
                                     block_target, vmem_limit)
        tile_m = _pick_rows(M, row_bytes, sub, block_target)
        return pl.pallas_call(
            functools.partial(_lane_reduce_kernel, power=power, approx=approx),
            out_shape=jax.ShapeDtypeStruct((M, C), dtype),
            grid_spec=pltpu.PrefetchScalarGridSpec(
                num_scalar_prefetch=0,
                grid=(pl.cdiv(M, tile_m),),
                in_specs=[pl.BlockSpec((tile_m, C), lambda i: (i, 0))],
                out_specs=pl.BlockSpec((tile_m, C), lambda i: (i, 0)),
            ),
            compiler_params=params,
        )(x2d)

    # --- C < 128 ---------------------------------------------------------
    G = _find_pack_factor(M, C)
    if G is not None:
        # Pack G logical rows per physical row: free row-major reshape (G | M),
        # no pad / no output slice -> zero extra HBM passes.
        L = G * C
        Mg = M // G
        xg = x2d.reshape(Mg, L)
        mask_dtype = jnp.bfloat16 if mxu_bf16 else jnp.float32
        lane = jnp.arange(L, dtype=jnp.int32) // C
        mask = (lane[:, None] == lane[None, :]).astype(mask_dtype)   # block-diag

        row_bytes = _round_up(L, 128) * itemsize
        tile_m = _pick_rows(Mg, row_bytes, sub, block_target)
        out = pl.pallas_call(
            functools.partial(_grouped_lane_kernel, power=power, approx=approx),
            out_shape=jax.ShapeDtypeStruct((Mg, L), dtype),
            grid_spec=pltpu.PrefetchScalarGridSpec(
                num_scalar_prefetch=0,
                grid=(pl.cdiv(Mg, tile_m),),
                in_specs=[pl.BlockSpec((tile_m, L), lambda i: (i, 0)),
                          pl.BlockSpec((L, L), lambda i: (0, 0))],
                out_specs=pl.BlockSpec((tile_m, L), lambda i: (i, 0)),
            ),
            compiler_params=params,
        )(xg, mask)
        return out.reshape(M, C)                 # free bitcast reshape

    # No pack factor divides M: plain lane-reduce directly on (M, C).  Loads and
    # stores are lane-masked (C < 128) but there are NO extra HBM pad/slice
    # passes — cheaper than the previous pad + slice copies when triggered.
    tile_m = _pick_rows(M, _round_up(C, 128) * itemsize, sub, block_target)
    return pl.pallas_call(
        functools.partial(_lane_reduce_kernel, power=power, approx=approx),
        out_shape=jax.ShapeDtypeStruct((M, C), dtype),
        grid_spec=pltpu.PrefetchScalarGridSpec(
            num_scalar_prefetch=0,
            grid=(pl.cdiv(M, tile_m),),
            in_specs=[pl.BlockSpec((tile_m, C), lambda i: (i, 0))],
            out_specs=pl.BlockSpec((tile_m, C), lambda i: (i, 0)),
        ),
        compiler_params=params,
    )(x2d)


def _normalize_middle_axis(x3d, power, approx):
    """x3d: (N, C, HW); reduction over axis 1 without any HBM transpose."""
    N, C, HW = x3d.shape
    dtype = x3d.dtype
    itemsize = jnp.dtype(dtype).itemsize
    sub = _sublane_multiple(dtype)
    block_target, vmem_limit = _budgets()

    # padded VMEM footprint of one (1, C, HW) slab (C -> sublane mult, HW -> 128)
    slab_padded = _round_up(C, sub) * _round_up(HW, 128) * itemsize
    if slab_padded <= block_target:
        thw = HW
        tn = max(1, block_target // slab_padded)
        tn = min(tn, max(1, pl.cdiv(N, _MIN_GRID_STEPS)))    # keep >=8 steps
        tn = min(tn, N)
    else:
        # tile HW; keep the largest thw the padded budget allows so the strided
        # per-channel DMA runs stay long (>= 1-2 KB).
        tn = 1
        lanes = max(128, (block_target // (_round_up(C, sub) * itemsize)) // 128 * 128)
        thw = min(lanes, _round_up(HW, 128))
        if thw >= HW:
            thw = HW

    grid = (pl.cdiv(N, tn), pl.cdiv(HW, thw))
    return pl.pallas_call(
        functools.partial(_sublane_reduce_kernel, power=power, approx=approx),
        out_shape=jax.ShapeDtypeStruct((N, C, HW), dtype),
        grid_spec=pltpu.PrefetchScalarGridSpec(
            num_scalar_prefetch=0,
            grid=grid,
            in_specs=[pl.BlockSpec((tn, C, thw), lambda i, j: (i, 0, j))],
            out_specs=pl.BlockSpec((tn, C, thw), lambda i, j: (i, 0, j)),
        ),
        compiler_params=pltpu.CompilerParams(
            dimension_semantics=("parallel", "parallel"),
            vmem_limit_bytes=vmem_limit),
    )(x3d)


def normalize(x, power=2, approx_reciprocal=False, mxu_bf16=False):
    """Pallas equivalent of torch Normalize.forward: Lp-normalize over dim=1."""
    if x.ndim == 2:
        return _normalize_last_axis(x, power, approx_reciprocal, mxu_bf16)
    if x.ndim >= 3:
        lead, C = x.shape[0], x.shape[1]
        hw = 1
        for d in x.shape[2:]:
            hw *= d
        out = _normalize_middle_axis(x.reshape(lead, C, hw), power, approx_reciprocal)
        return out.reshape(x.shape)
    raise ValueError(f"unsupported rank {x.ndim}")


# ----------------------------- reference & demo -------------------------------


def _reference(x, power=2):
    norm = jnp.sum(x ** power, axis=1, keepdims=True) ** (1.0 / power)
    return x / (norm + _EPS)


if __name__ == "__main__":
    key = jax.random.PRNGKey(0)
    k1, k2, k3, k4 = jax.random.split(key, 4)

    # 2-D (64, 32): C < 128, M divisible by pack factor -> zero-copy grouped path
    x_feat = jax.random.normal(k1, (64, 32), dtype=jnp.float32)
    out_feat = jax.block_until_ready(normalize(x_feat, power=2))
    ref_feat = _reference(x_feat, power=2)
    assert jnp.allclose(out_feat, ref_feat, atol=1e-5, rtol=1e-5), "2-D grouped mismatch"

    # approx-reciprocal (EUP) and bf16-MXU variants: looser tolerances
    out_fast = jax.block_until_ready(normalize(x_feat, power=2, approx_reciprocal=True))
    assert jnp.allclose(out_fast, ref_feat, atol=1e-2, rtol=1e-2), "approx path mismatch"
    out_bf16 = jax.block_until_ready(normalize(x_feat, power=2, mxu_bf16=True))
    assert jnp.allclose(out_bf16, ref_feat, atol=2e-2, rtol=2e-2), "bf16 MXU path mismatch"

    # 2-D (63, 32): M not divisible by 4 -> divisor search finds G=7, still zero-copy
    x_odd = jax.random.normal(k3, (63, 32), dtype=jnp.float32)
    out_odd = jax.block_until_ready(normalize(x_odd, power=2))
    assert jnp.allclose(out_odd, _reference(x_odd), atol=1e-5, rtol=1e-5), "G-search mismatch"

    # 2-D (61, 32): prime M -> no pack factor; plain lane-reduce fallback (no copies)
    x_prime = jax.random.normal(k4, (61, 32), dtype=jnp.float32)
    out_prime = jax.block_until_ready(normalize(x_prime, power=2))
    assert jnp.allclose(out_prime, _reference(x_prime), atol=1e-5, rtol=1e-5), "fallback mismatch"

    # 4-D NCHW (2, 4, 16, 16): channel reduction over sublanes, no HBM transposes
    x_img = jax.random.normal(k2, (2, 4, 16, 16), dtype=jnp.float32)
    out_img = jax.block_until_ready(normalize(x_img, power=2))
    assert jnp.allclose(out_img, _reference(x_img), atol=1e-5, rtol=1e-5), "4-D mismatch"

    print("KERNEL_OK")
</pallas_src>

<mosaic_0001>
module attributes {stable_mosaic.version = 11 : i64} {
  func.func @_grouped_lane_kernel(%arg0: i32, %arg1: memref<8x128xf32, #tpu.memory_space<vmem>>, %arg2: memref<128x128xf32, #tpu.memory_space<vmem>>, %arg3: memref<8x128xf32, #tpu.memory_space<vmem>>) attributes {dimension_semantics = [#tpu.dimension_semantics<parallel>], iteration_bounds = array<i64: 2>, scalar_prefetch = 0 : i64, scratch_operands = 0 : i64, tpu.core_type = #tpu.core_type<tc>, window_params = [{transform_indices = @transform_0, window_bounds = array<i64: 8, 128>}, {pipeline_mode = #tpu.pipeline_mode<synchronous>, transform_indices = @transform_1, window_bounds = array<i64: 128, 128>}, {transform_indices = @transform_2, window_bounds = array<i64: 8, 128>}]} {
    %c0 = arith.constant 0 : index
    %c0_0 = arith.constant 0 : index
    %0 = vector.load %arg1[%c0, %c0_0] : memref<8x128xf32, #tpu.memory_space<vmem>>, vector<8x128xf32>
    %1 = arith.mulf %0, %0 : vector<8x128xf32>
    %c0_1 = arith.constant 0 : index
    %c0_2 = arith.constant 0 : index
    %2 = vector.load %arg2[%c0_1, %c0_2] : memref<128x128xf32, #tpu.memory_space<vmem>>, vector<128x128xf32>
    %cst = arith.constant dense<0.000000e+00> : vector<8x128xf32>
    %3 = tpu.matmul %1, %2, %cst {dimension_numbers = #tpu.dot_dimension_numbers<[1], [0], [0], [1], [0, 0, 1, 1], [], []>} : vector<8x128xf32>, vector<128x128xf32>, vector<8x128xf32> -> vector<8x128xf32>
    %4 = math.sqrt %3 : vector<8x128xf32>
    %cst_3 = arith.constant 1.000000e-07 : f32
    %5 = vector.broadcast %cst_3 : f32 to vector<8x128xf32>
    %6 = arith.addf %4, %5 : vector<8x128xf32>
    %cst_4 = arith.constant 1.000000e+00 : f32
    %7 = vector.broadcast %cst_4 : f32 to vector<8x128xf32>
    %8 = arith.divf %7, %6 : vector<8x128xf32>
    %9 = arith.mulf %0, %8 : vector<8x128xf32>
    %c0_5 = arith.constant 0 : index
    %c0_6 = arith.constant 0 : index
    %10 = vector.load %arg3[%c0_5, %c0_6] : memref<8x128xf32, #tpu.memory_space<vmem>>, vector<8x128xf32>
    tpu.vector_store %arg3[%c0_5, %c0_6], %9 {strides = array<i32>} : memref<8x128xf32, #tpu.memory_space<vmem>>, vector<8x128xf32>,
    return
  }
  func.func @transform_0(%arg0: i32) -> (i32, i32) {
    %c0_i32 = arith.constant 0 : i32
    %c0_i32_0 = arith.constant 0 : i32
    return %arg0, %c0_i32 : i32, i32
  }
  func.func @transform_1(%arg0: i32) -> (i32, i32) {
    %c0_i32 = arith.constant 0 : i32
    %c0_i32_0 = arith.constant 0 : i32
    %c0_i32_1 = arith.constant 0 : i32
    return %c0_i32, %c0_i32_0 : i32, i32
  }
  func.func @transform_2(%arg0: i32) -> (i32, i32) {
    %c0_i32 = arith.constant 0 : i32
    %c0_i32_0 = arith.constant 0 : i32
    return %arg0, %c0_i32 : i32, i32
  }
}

</mosaic_0001>

<bundles_post_ra>
// kernel: tpu_custom_call.1
= control target key start
LH: loop header
LB: loop body
LE: loop exit
PB: predicated region body
PF: predicated region fallthrough
CT: control target
= control target key end

     0   :  { %7 = vsyncpa [#allocation3], 0  ;;  %s880_s0 = inlined_call_operand.hbm [shape: f32[16,128], index: 0, kind: input, shape index: {}]   ;;  %s881_s1 = inlined_call_operand.hbm [shape: f32[128,128], index: 1, kind: input, shape index: {}]   ;;  %s882_s2 = inlined_call_operand.hbm [shape: f32[16,128], index: 2, kind: output, shape index: {}]  }
   0x1   :  { %9 = vsyncpa [#allocation3 + $0x1], 0 }
   0x2   :  { %10 = vsyncpa [#allocation6], 0 }
   0x3   :  { %11 = vsyncpa [#allocation4], 0 }
   0x4   :  { %13 = vsyncpa [#allocation4 + $0x1], 0  ;;  %s677_s9 = smov 0   ;;  %s679_s10 = smov 0  }
   0x5   :  { %s681_s11 = smov 0   ;;  %s683_s12 = smov 0  }
   0x6 LB: > { %s698_s13 = sadd.s32 4294967295, %s652_s12   ;;  %s368_s14 = sadd.s32 4294967294, %s652_s12   ;;  %s652_s12 = sphi %s683_s12, %s902_s12   ;;  %s648_s11 = sphi %s681_s11, %s901_s11   ;;  %s644_s10 = sphi %s679_s10, %s900_s10   ;;  %s640_s9 = sphi %s677_s9, %s899_s9  }
   0x7   : > { %p39_p0 = scmp.ne.s32.totalorder %s644_s10, %s640_s9  ;;  %p883_p1 = scmp.eq.s32.totalorder %s698_s13, 0 }
   0x8   : > { %p90_p3 = scmp.eq.s32.totalorder %s368_s14, 1  ;;  %p369_p5 = scmp.ge.s32.totalorder %s652_s12, 1 }
   0x9   : > { %p707_p4 = por %p883_p1, %p39_p0  ;;  %p97_p7 = scmp.lt.s32.totalorder %s652_s12, 3 }
   0xa   : > { %p712_p6 = por %p90_p3, %p39_p0  ;;  %s654_s18 = smov [#allocation5]  }
   0xb   : > { %s886_s15 = scalar_select %p707_p4, 1, 0 }
   0xc   : > { %s887_s16 = scalar_select %p712_p6, 1, 0 }
   0xd   : > { %p717_p8 = pnand %p369_p5, %p97_p7  ;;  %s109_s19 = sshll.u32 %s654_s18, 4  ;;  %s721_s19 = int_to_ptr.vmem [resolvable:$true] %s109_s19 }
   0xe   : > { %s733_s21 = sadd.s32 1, %s652_s12   ;;  %s26_s22 = sadd.s32 1, %s648_s11 }
   0xf   : > { %s888_s17 = scalar_select %p717_p8, 1, 0 }
  0x10   : > { %p466_p9 = pneg %p717_p8  ;;  %s23_s23 = ssub.s32 %s652_s12, %s733_s21 }
  0x11   : > { %s524_s26 = scalar_lea.hbm %s881_s1, 2048 }
  0x12   : > { %p728_p11 = pnand %p466_p9, %p883_p1  ;;  %p525_p12 = scmp.ne.s32.totalorder %s881_s1, %s524_s26 }
  0x13   : > { %p531_p5 = scmp.lt.u32.totalorder %s524_s26, %s881_s1 }
  0x14   : > { %p526_p13 = pneg %p728_p11 }
  0x16   : > { %p527_p0 = pnand %p526_p13, %p525_p12 }
  0x18   : > { %p528_p3 = pneg %p527_p0 }
  0x1a   : > { %p533_p7 = pnand %p531_p5, %p528_p3 }
  0x1c   : > { %536 = shalt.err (!%p533_p7)
}
  0x1d   : > { %s537_s3 = scalar_lea.vmem %s721_s19, 2048  ;;  %p545_p2 = scmp.lt.s32.totalorder %s721_s19, %s721_s19 }
  0x1e   : > { %p538_p9 = scmp.ne.s32.totalorder %s721_s19, %s537_s3  ;;  %p546_p6 = scmp.lt.s32.totalorder %s537_s3, %s537_s3 }
  0x20   : > { %p540_p10 = pnand %p538_p9, %p526_p13  ;;  %p547_p4 = por %p546_p6, %p545_p2 }
  0x22   : > { %p541_p1 = pneg %p540_p10 }
  0x24   : > { %p548_p8 = pnand %p547_p4, %p541_p1 }
  0x26   : > { %551 = shalt.err (!%p548_p8)
}
  0x27   : > { %s655_s4 = smov 128   ;;  %s656_s5 = smov 8  }
  0x28   : > { %469 = dma.hbm_to_vmem [thread:$0]  (!%p728_p11), %s881_s1, 2048, %s721_s19, [#allocation6], %s655_s4, %s655_s4, %s656_s5  }
  0x29   : > { %p24_p2 = scmp.eq.s32.totalorder %s23_s23, 0  ;;  %p33_p1 = scmp.ne.s32.totalorder %s648_s11, %s644_s10 }
  0x2a   : > { %p34_p4 = scmp.eq.s32.totalorder %s652_s12, 0  ;;  %p479_p6 = scmp.lt.s32.totalorder %s652_s12, 2 }
  0x2b   : > { %s764_s8 = scalar_select %p24_p2, %s648_s11, %s26_s22  }
  0x2c   : > { %p35_p8 = por %p34_p4, %p33_p1  ;;  %p890_p10 = scmp.eq.s32.totalorder %s698_s13, 1 }
  0x2d   : > { %s123_s18 = sand.u32 1, %s648_s11   ;;  %s373_s24 = sshll.u32 %s652_s12, 7 }
  0x2e   : > { %p768_p12 = por %p890_p10, %p33_p1  ;;  %s372_s25 = sshll.u32 %s123_s18, 3 }
  0x2f   : > { %s777_s27 = scalar_lea.hbm %s880_s0, %s373_s24  ;;  %s127_s19 = scalar_lea.vmem [#allocation2], %s372_s25 }
  0x30   : > { %s134_s22 = sshll.u32 %s127_s19, 4  ;;  %p779_p11 = pnand %p479_p6, %p35_p8  ;;  %s783_s22 = int_to_ptr.vmem [resolvable:$true] %s134_s22 }
  0x31   : > { %s124_s28 = scalar_lea.sflag [#allocation3], %s123_s18  ;;  %s552_s29 = scalar_lea.hbm %s777_s27, 128 }
  0x32   : > { %p553_p13 = scmp.ne.s32.totalorder %s777_s27, %s552_s29  ;;  %p554_p0 = pneg %p779_p11 }
  0x33   : > { %s557_s4 = scalar_lea.hbm %s880_s0, 256  ;;  %p558_p7 = scmp.lt.u32.totalorder %s777_s27, %s880_s0 }
  0x34   : > { %p555_p3 = pnand %p554_p0, %p553_p13  ;;  %p559_p9 = scmp.lt.u32.totalorder %s557_s4, %s552_s29 }
  0x35   : > { %p561_p1 = scmp.lt.u32.totalorder %s552_s29, %s777_s27 }
  0x36   : > { %p556_p5 = pneg %p555_p3  ;;  %p560_p2 = por %p559_p9, %p558_p7 }
  0x38   : > { %p562_p4 = por %p561_p1, %p560_p2 }
  0x3a   : > { %p563_p6 = pnand %p562_p4, %p556_p5 }
  0x3c   : > { %566 = shalt.err (!%p563_p6)
}
  0x3d   : > { %s567_s7 = scalar_lea.vmem %s783_s22, 128  ;;  %s657_s18 = smov [#allocation2]  }
  0x3e   : > { %p568_p8 = scmp.ne.s32.totalorder %s783_s22, %s567_s7  ;;  %s572_s24 = sshll.u32 %s657_s18, 4  ;;  %s573_s24 = int_to_ptr.vmem [resolvable:$false] %s572_s24 }
  0x3f   : > { %s574_s25 = scalar_lea.vmem %s573_s24, 256  ;;  %p575_p3 = scmp.lt.s32.totalorder %s783_s22, %s573_s24 }
  0x40   : > { %p570_p10 = pnand %p568_p8, %p554_p0  ;;  %p576_p7 = scmp.lt.s32.totalorder %s574_s25, %s567_s7 }
  0x42   : > { %p571_p13 = pneg %p570_p10  ;;  %p577_p9 = por %p576_p7, %p575_p3 }
  0x44   : > { %p578_p2 = pnand %p577_p9, %p571_p13 }
  0x46   : > { %581 = shalt.err (!%p578_p2)
}
  0x47   : > { %473 = dma.hbm_to_vmem [thread:$0]  (!%p779_p11), %s777_s27, 128, %s783_s22, %s124_s28  }
  0x48   : > { %p893_p5 = scmp.ne.s32.totalorder %s888_s17, 0 }
  0x49   : > { %s813_s20 = sand.u32 (!%p893_p5), 1, %s644_s10   ;;  %p894_p0 = scmp.ne.s32.totalorder (!%p893_p5), %s886_s15, 0 }
  0x4a   : > { %143 = sbr.rel (%p893_p5) target bundleno = 375 (0x177), region = 28  ;;  %s375_s26 = sshll.u32 (!%p893_p5), %s813_s20, 3 }
  0x4b   : > { %s146_s19 = scalar_lea.sflag (!%p893_p5), [#allocation3], %s813_s20  ;;  %s819_s29 = scalar_lea.vmem (!%p893_p5), [#allocation2], %s375_s26 }
  0x51   : > { %627 = dma.done.wait (%p894_p0), %s146_s19, 128  }
  0x52   : > { %629 = vsyncadd (%p894_p0), %s146_s19, 4294967168  ;;  %p895_p11 = scmp.eq.s32.totalorder %s698_s13, 0 }
  0x54   : > { %631 = dma.done.wait (%p895_p11), [#allocation6], 2048   ;;  %p896_p1 = pmov %p895_p11 }
  0x55   : > { %v658_v0 = vmov 0.0|0.0   ;;  %vm659_vm0 = vmmov 0   ;;  %v660_v1 = vmov 0.0   ;;  %v176_v2 = vld [vmem:[#allocation5] sm:$0xff]  ;;  %v177_v3 = vld [vmem:[#allocation5 + $0x8] sm:$0xff]  ;;  %v178_v4 = vld [vmem:[#allocation5 + $0x10] sm:$0xff] }
  0x56   : > { %633 = vsyncadd (%p896_p1), [#allocation6], 4294965248  ;;  %434 = vmatprep.subr.bf16.mxu0 %v658_v0  ;;  %431 = vmatprep.mubr.msk.f32.mxu0 %vm659_vm0, %v660_v1  ;;  %v435_v5 = vpack.c.bf16 %v177_v3, %v176_v2  ;;  %v179_v6 = vld [vmem:[#allocation5 + $0x18] sm:$0xff]  ;;  %v180_v8 = vld [vmem:[#allocation5 + $0x20] sm:$0xff]  ;;  %s379_s15 = sshll.u32 %s698_s13, 7  ;;  %s173_s17 = scalar_lea.vmem [#allocation7], %s375_s26 }
  0x57   : > { %v438_v7 = vpack.c.bf16 %v179_v6, %v178_v4  ;;  %v181_v9 = vld [vmem:[#allocation5 + $0x28] sm:$0xff]  ;;  %v182_v11 = vld [vmem:[#allocation5 + $0x30] sm:$0xff]  ;;  %v183_v12 = vld [vmem:[#allocation5 + $0x38] sm:$0xff]  ;;  %s288_s27 = sshll.u32 %s173_s17, 4  ;;  %s836_s28 = scalar_lea.hbm %s882_s2, %s379_s15  ;;  %s838_s27 = int_to_ptr.vmem [resolvable:$true] %s288_s27 }
  0x58   : > { %436 = vmatpush3.bf16.msra.mxu0 %v435_v5  ;;  %v441_v10 = vpack.c.bf16 %v181_v9, %v180_v8  ;;  %v444_v13 = vpack.c.bf16 %v183_v12, %v182_v11  ;;  %v184_v14 = vld [vmem:[#allocation5 + $0x40] sm:$0xff]  ;;  %v185_v15 = vld [vmem:[#allocation5 + $0x48] sm:$0xff]  ;;  %v186_v17 = vld [vmem:[#allocation5 + $0x50] sm:$0xff]  ;;  %s275_s30 = scalar_lea.sflag [#allocation4], %s813_s20  ;;  %s582_s3 = scalar_lea.vmem %s838_s27, 128 }
  0x59   : > { %437 = vmatprep.subr.bf16.mxu0 %v658_v0  ;;  %v447_v16 = vpack.c.bf16 %v185_v15, %v184_v14  ;;  %v187_v18 = vld [vmem:[#allocation5 + $0x58] sm:$0xff]  ;;  %v188_v20 = vld [vmem:[#allocation5 + $0x60] sm:$0xff]  ;;  %v189_v21 = vld [vmem:[#allocation5 + $0x68] sm:$0xff]  ;;  %p583_p4 = scmp.ne.s32.totalorder %s838_s27, %s582_s3  ;;  %s661_s13 = smov [#allocation7]  }
  0x5a   : > { %v450_v19 = vpack.c.bf16 %v187_v18, %v186_v17  ;;  %v453_v22 = vpack.c.bf16 %v189_v21, %v188_v20  ;;  %v190_v23 = vld [vmem:[#allocation5 + $0x70] sm:$0xff]  ;;  %v191_v24 = vld [vmem:[#allocation5 + $0x78] sm:$0xff]  ;;  %s586_s4 = sshll.u32 %s661_s13, 4  ;;  %s587_s4 = int_to_ptr.vmem [resolvable:$false] %s586_s4 }
  0x5b   : > { %v456_v25 = vpack.c.bf16 %v191_v24, %v190_v23  ;;  %v174_v26 = vld [vmem:[%s819_s29] sm:$0xff]  ;;  %p584_p6 = pnand %p583_p4, %p768_p12  ;;  %s588_s5 = scalar_lea.vmem %s587_s4, 256 }
  0x5c   : > { %439 = vmatpush3.bf16.msra.mxu0 %v438_v7  ;;  %v175_v27 = vmul.f32 %v174_v26, %v174_v26  ;;  %p589_p10 = scmp.lt.s32.totalorder %s838_s27, %s587_s4  ;;  %p590_p13 = scmp.lt.s32.totalorder %s588_s5, %s582_s3 }
  0x5d   : > { %440 = vmatprep.subr.bf16.mxu0 %v658_v0  ;;  %p585_p8 = pneg %p584_p6 }
  0x5e   : > { %p591_p3 = por %p590_p13, %p589_p10 }
  0x60   : > { %442 = vmatpush3.bf16.msra.mxu0 %v441_v10  ;;  %p592_p7 = pnand %p591_p3, %p585_p8 }
  0x61   : > { %443 = vmatprep.subr.bf16.mxu0 %v658_v0 }
  0x64   : > { %445 = vmatpush3.bf16.msra.mxu0 %v444_v13 }
  0x65   : > { %446 = vmatprep.subr.bf16.mxu0 %v658_v0 }
  0x68   : > { %448 = vmatpush3.bf16.msra.mxu0 %v447_v16 }
  0x69   : > { %449 = vmatprep.subr.bf16.mxu0 %v658_v0 }
  0x6c   : > { %451 = vmatpush3.bf16.msra.mxu0 %v450_v19 }
  0x6d   : > { %452 = vmatprep.subr.bf16.mxu0 %v658_v0 }
  0x70   : > { %454 = vmatpush3.bf16.msra.mxu0 %v453_v22 }
  0x71   : > { %455 = vmatprep.subr.bf16.mxu0 %v658_v0 }
  0x74   : > { %457 = vmatpush3.bf16.msra.mxu0 %v456_v25 }
  0x77   : > { %432 = vmatmul.mubr.f32.vlgmr.msra.gmra.mrb[0].mxu0 %v175_v27 }
 0x14a   : > { %v258_v28 = vpop.f32.mrb[0].mxu0 }
 0x14b   : > { %520 = vrsqrt.f32 %v258_v28  ;;  %v433_v29 = vpop.f32.mrb[1].mxu0  ;;  %vm264_vm1 = vcmp.eq.f32.partialorder %v258_v28, inf  ;;  %v267_v32 = vand.u32 2147483648, %v258_v28  ;;  %vm266_vm2 = vcmp.eq.f32.partialorder %v258_v28, 0.0 }
 0x155   : > { %v521_v30 = vpop.eup %520 }
 0x156   : > { %v263_v31 = vmul.f32 %v521_v30, %v258_v28 }
 0x158   : > { %v265_v33 = vsel %vm264_vm1, %v258_v28, %v263_v31 }
 0x159   : > { %v268_v34 = vsel %vm266_vm2, %v267_v32, %v265_v33 }
 0x15a   : > { %v269_v35 = vadd.f32 1e-07, %v268_v34 }
 0x15c   : > { %522 = vrcp.f32 %v269_v35 }
 0x166   : > { %v523_v36 = vpop.eup %522 }
 0x167   : > { %v272_v37 = vmul.f32 %v523_v36, %v174_v26 }
 0x169   : > { %273 = vst [vmem:[%s173_s17] sm:$0xff] %v272_v37 }
 0x16a   : > { %595 = shalt.err (!%p592_p7)
}
 0x16b   : > { %s596_s6 = scalar_lea.hbm %s836_s28, 128  ;;  %s600_s24 = scalar_lea.hbm %s882_s2, 256 }
 0x16c   : > { %p597_p9 = scmp.ne.s32.totalorder %s836_s28, %s596_s6  ;;  %p601_p0 = scmp.lt.u32.totalorder %s836_s28, %s882_s2 }
 0x16d   : > { %p602_p11 = scmp.lt.u32.totalorder %s600_s24, %s596_s6  ;;  %p604_p4 = scmp.lt.u32.totalorder %s596_s6, %s836_s28 }
 0x16e   : > { %p598_p2 = pnand %p597_p9, %p768_p12 }
 0x16f   : > { %p603_p1 = por %p602_p11, %p601_p0 }
 0x170   : > { %p599_p5 = pneg %p598_p2 }
 0x171   : > { %p605_p6 = por %p604_p4, %p603_p1 }
 0x173   : > { %p606_p8 = pnand %p605_p6, %p599_p5 }
 0x175   : > { %609 = shalt.err (!%p606_p8)
}
 0x176   : > { %464 = dma.vmem_to_hbm [thread:$0]  (%p768_p12), %s838_s27, 128, %s836_s28, %s275_s30  }
 0x177 PF: > { %s300_s26 = sand.u32 1, %s640_s9   ;;  %p897_p10 = scmp.ne.s32.totalorder %s887_s16, 0 }
 0x178   : > { %p898_p13 = scmp.ge.s32.totalorder %s652_s12, 2  ;;  %s301_s19 = scalar_lea.sflag [#allocation4], %s300_s26 }
 0x17a   : > { %p475_p3 = pnand %p898_p13, %p897_p10 }
 0x17c   : > { %635 = dma.done.wait (!%p475_p3), %s301_s19, 128  }
 0x17d   : > { %637 = vsyncadd (!%p475_p3), %s301_s19, 4294967168  ;;  %p16_p7 = scmp.ge.s32.totalorder %s733_s21, 4   ;;  %s899_s9 = smov %s644_s10 }
 0x17e   : > { %s900_s10 = smov %s648_s11  ;;  %s901_s11 = smov %s764_s8 }
 0x17f   : > { %s902_s12 = smov %s733_s21  ;;  %18 = sbr.rel (!%p16_p7) target bundleno = 6 (0x6), region = 77 }
 0x186   :  { %306 = vsyncpa [#allocation3], 1 }
 0x187   :  { %308 = vsyncpa [#allocation3 + $0x1], 1 }
 0x188   :  { %309 = vsyncpa [#allocation6], 1 }
 0x189   :  { %310 = vsyncpa [#allocation4], 1 }
 0x18a   :  { %312 = vsyncpa [#allocation4 + $0x1], 1 }

</bundles_post_ra>
